<compile_context>
chip_gen: v7x
topology: tpu7x:2x2x1
jax: 0.10.0
libtpu: 0.0.40
codegen_flags: <defaults>
</compile_context>

<pallas_src>
import jax
import jax.numpy as jnp
from jax.experimental import pallas as pl
from jax.experimental.pallas import tpu as pltpu


def _sigmoid_mul_kernel(gate_ref, x_ref, o_ref):
    # gate_ref: (TR, 1), x_ref / o_ref: (TR, HW)
    g = jax.nn.sigmoid(gate_ref[...].astype(jnp.float32))   # tiny, f32 on EUP
    x = x_ref[...]
    o_ref[...] = x * g.astype(x.dtype)                       # native-dtype VPU mul


def _choose_block_rows(n_rows, hw, itemsize):
    """Row tile: multiple of 8 sublanes, <= ~512 KiB per block, and enough grid
    steps that the DMA pipeline (and v7x's 2 TCs) have work to overlap."""
    bytes_per_row = max(hw * itemsize, 1)
    target_block_bytes = 512 * 1024          # 4x double-buffered blocks ~ 2 MiB VMEM
    tr = max(8, (target_block_bytes // bytes_per_row) // 8 * 8)
    # Prefer >= ~8 pipeline steps when there are enough rows.
    tr_for_steps = max(8, (n_rows // 8) // 8 * 8)
    tr = min(tr, tr_for_steps)
    if tr >= n_rows:
        return n_rows                         # single full-extent block (always legal)
    return tr


def sigmoid_mul(x317, x313):
    """x317: (N, C, 1, 1) gate. x313: (N, C, H, W) feature. Returns x313 * sigmoid(x317)."""
    N, C, H, W = x313.shape
    assert x317.shape == (N, C, 1, 1)
    HW = H * W
    R = N * C

    # Free (contiguous) reshapes: rows = (n, c) pairs, lanes = spatial.
    x_flat = x313.reshape(R, HW)
    g_flat = x317.reshape(R, 1)

    tr = _choose_block_rows(R, HW, x313.dtype.itemsize)
    grid = (pl.cdiv(R, tr),)

    cost = pl.CostEstimate(
        flops=R * HW,                          # one multiply per element
        transcendentals=R,                     # one sigmoid per (n, c)
        bytes_accessed=2 * x_flat.size * x_flat.dtype.itemsize
        + g_flat.size * g_flat.dtype.itemsize,
    )

    out = pl.pallas_call(
        _sigmoid_mul_kernel,
        out_shape=jax.ShapeDtypeStruct((R, HW), x313.dtype),
        grid_spec=pltpu.PrefetchScalarGridSpec(
            num_scalar_prefetch=0,
            grid=grid,
            in_specs=[
                pl.BlockSpec((tr, 1), lambda i: (i, 0)),     # gate rows (tiny)
                pl.BlockSpec((tr, HW), lambda i: (i, 0)),    # feature rows
            ],
            out_specs=pl.BlockSpec((tr, HW), lambda i: (i, 0)),
        ),
        compiler_params=pltpu.CompilerParams(
            dimension_semantics=("parallel",),               # megacore-splittable
        ),
        cost_estimate=cost,
    )(g_flat, x_flat)

    return out.reshape(N, C, H, W)


if __name__ == "__main__":
    key = jax.random.PRNGKey(0)
    k1, k2 = jax.random.split(key)

    # Small shapes consistent with the module's SE-block pattern:
    # (N, C, H, W) feature with an (N, C, 1, 1) gate; HW = 14*14 like the original.
    N, C, H, W = 2, 32, 14, 14
    x313 = jax.random.normal(k1, (N, C, H, W), dtype=jnp.float32)
    x317 = jax.random.normal(k2, (N, C, 1, 1), dtype=jnp.float32)

    out = sigmoid_mul(x317, x313)
    jax.block_until_ready(out)

    ref = x313 * jax.nn.sigmoid(x317)
    assert out.shape == (N, C, H, W)
    assert jnp.allclose(out, ref, atol=1e-6, rtol=1e-6)

    # bf16 path: kernel multiplies in bf16 (no full-tile f32 upcast).
    xb = x313.astype(jnp.bfloat16)
    gb = x317.astype(jnp.bfloat16)
    out_b = sigmoid_mul(gb, xb)
    jax.block_until_ready(out_b)
    ref_b = xb.astype(jnp.float32) * jax.nn.sigmoid(gb.astype(jnp.float32))
    assert jnp.allclose(out_b.astype(jnp.float32), ref_b, atol=2e-2, rtol=2e-2)

    print("KERNEL_OK")
</pallas_src>

<mosaic_0001>
module attributes {stable_mosaic.version = 11 : i64} {
  func.func @_sigmoid_mul_kernel(%arg0: i32, %arg1: memref<8x1xf32, #tpu.memory_space<vmem>>, %arg2: memref<8x196xf32, #tpu.memory_space<vmem>>, %arg3: memref<8x196xf32, #tpu.memory_space<vmem>>) attributes {dimension_semantics = [#tpu.dimension_semantics<parallel>], iteration_bounds = array<i64: 8>, scalar_prefetch = 0 : i64, scratch_operands = 0 : i64, tpu.core_type = #tpu.core_type<tc>, window_params = [{transform_indices = @transform_0, window_bounds = array<i64: 8, 1>}, {transform_indices = @transform_1, window_bounds = array<i64: 8, 196>}, {transform_indices = @transform_2, window_bounds = array<i64: 8, 196>}]} {
    %c0 = arith.constant 0 : index
    %c0_0 = arith.constant 0 : index
    %0 = vector.load %arg1[%c0, %c0_0] : memref<8x1xf32, #tpu.memory_space<vmem>>, vector<8x1xf32>
    %1 = arith.negf %0 : vector<8x1xf32>
    %2 = math.exp %1 : vector<8x1xf32>
    %cst = arith.constant 1.000000e+00 : f32
    %3 = vector.broadcast %cst : f32 to vector<8x1xf32>
    %4 = arith.addf %3, %2 : vector<8x1xf32>
    %5 = arith.divf %3, %4 : vector<8x1xf32>
    %c0_1 = arith.constant 0 : index
    %c0_2 = arith.constant 0 : index
    %6 = vector.load %arg2[%c0_1, %c0_2] : memref<8x196xf32, #tpu.memory_space<vmem>>, vector<8x196xf32>
    %7 = vector.broadcast %5 : vector<8x1xf32> to vector<8x196xf32>
    %8 = arith.mulf %6, %7 : vector<8x196xf32>
    %c0_3 = arith.constant 0 : index
    %c0_4 = arith.constant 0 : index
    %9 = vector.load %arg3[%c0_3, %c0_4] : memref<8x196xf32, #tpu.memory_space<vmem>>, vector<8x196xf32>
    tpu.vector_store %arg3[%c0_3, %c0_4], %8 {strides = array<i32>} : memref<8x196xf32, #tpu.memory_space<vmem>>, vector<8x196xf32>,
    return
  }
  func.func @transform_0(%arg0: i32) -> (i32, i32) {
    %c0_i32 = arith.constant 0 : i32
    %c0_i32_0 = arith.constant 0 : i32
    return %arg0, %c0_i32 : i32, i32
  }
  func.func @transform_1(%arg0: i32) -> (i32, i32) {
    %c0_i32 = arith.constant 0 : i32
    %c0_i32_0 = arith.constant 0 : i32
    return %arg0, %c0_i32 : i32, i32
  }
  func.func @transform_2(%arg0: i32) -> (i32, i32) {
    %c0_i32 = arith.constant 0 : i32
    %c0_i32_0 = arith.constant 0 : i32
    return %arg0, %c0_i32 : i32, i32
  }
}

</mosaic_0001>

<bundles_post_ra>
// kernel: tpu_custom_call.1
= control target key start
LH: loop header
LB: loop body
LE: loop exit
PB: predicated region body
PF: predicated region fallthrough
CT: control target
= control target key end

     0   :  { %7 = vsyncpa [#allocation3], 0  ;;  %s643_s0 = inlined_call_operand.vmem [shape: f32[64,1], index: 0, kind: input, shape index: {}]   ;;  %s644_s1 = inlined_call_operand.hbm [shape: f32[64,196], index: 1, kind: input, shape index: {}]   ;;  %s645_s2 = inlined_call_operand.hbm [shape: f32[64,196], index: 2, kind: output, shape index: {}]  }
   0x1   :  { %9 = vsyncpa [#allocation3 + $0x1], 0 }
   0x2   :  { %10 = vsyncpa [#allocation4], 0 }
   0x3   :  { %12 = vsyncpa [#allocation4 + $0x1], 0  ;;  %s479_s9 = smov 0   ;;  %s481_s10 = smov 0  }
   0x4   :  { %s483_s11 = smov 0   ;;  %s485_s12 = smov 0  }
   0x5 LB: > { %s500_s13 = sadd.s32 4294967295, %s459_s12   ;;  %s293_s14 = sadd.s32 4294967294, %s459_s12   ;;  %s459_s12 = sphi %s485_s12, %s659_s12   ;;  %s455_s11 = sphi %s483_s11, %s658_s11   ;;  %s451_s10 = sphi %s481_s10, %s657_s10   ;;  %s447_s9 = sphi %s479_s9, %s656_s9  }
   0x6   : > { %s504_s15 = sadd.s32 1, %s459_s12   ;;  %s51_s16 = sadd.s32 1, %s455_s11 }
   0x7   : > { %s48_s17 = ssub.s32 %s459_s12, %s504_s15  ;;  %p58_p0 = scmp.ne.s32.totalorder %s455_s11, %s451_s10 }
   0x8   : > { %p49_p1 = scmp.eq.s32.totalorder %s48_s17, 0  ;;  %p59_p2 = scmp.eq.s32.totalorder %s459_s12, 0 }
   0x9   : > { %p64_p3 = scmp.ne.s32.totalorder %s451_s10, %s447_s9  ;;  %p65_p4 = scmp.eq.s32.totalorder %s500_s13, 0 }
   0xa   : > { %s516_s18 = scalar_select %p49_p1, %s455_s11, %s51_s16  }
   0xb   : > { %p518_p5 = por %p59_p2, %p58_p0  ;;  %p522_p6 = por %p65_p4, %p64_p3 }
   0xc   : > { %p88_p7 = scmp.eq.s32.totalorder %s500_s13, 7  ;;  %p94_p8 = scmp.eq.s32.totalorder %s293_s14, 7 }
   0xd   : > { %p323_p9 = scmp.lt.s32.totalorder %s459_s12, 8  ;;  %s121_s23 = sand.u32 1, %s455_s11  }
   0xe   : > { %p528_p10 = por %p88_p7, %p58_p0  ;;  %p532_p11 = por %p94_p8, %p64_p3 }
   0xf   : > { %s309_s24 = sshll.u32 %s459_s12, 8  ;;  %s296_s25 = sshll.u32 %s121_s23, 4 }
  0x10   : > { %s649_s21 = scalar_select %p528_p10, 1, 0 }
  0x11   : > { %s650_s22 = scalar_select %p532_p11, 1, 0 }
  0x12   : > { %s541_s28 = scalar_lea.hbm %s644_s1, %s309_s24  ;;  %s125_s29 = scalar_lea.vmem [#allocation2], %s296_s25 }
  0x13   : > { %s133_s30 = sshll.u32 %s125_s29, 4  ;;  %p545_p12 = pnand %p323_p9, %p518_p5  ;;  %s549_s30 = int_to_ptr.vmem [resolvable:$true] %s133_s30 }
  0x14   : > { %s122_s4 = scalar_lea.sflag [#allocation3], %s121_s23  ;;  %s363_s5 = scalar_lea.hbm %s541_s28, 256 }
  0x15   : > { %p364_p1 = scmp.ne.s32.totalorder %s541_s28, %s363_s5  ;;  %p365_p2 = pneg %p545_p12 }
  0x16   : > { %s368_s8 = scalar_lea.hbm %s644_s1, 2048  ;;  %p369_p5 = scmp.lt.u32.totalorder %s541_s28, %s644_s1 }
  0x17   : > { %p366_p3 = pnand %p365_p2, %p364_p1  ;;  %p370_p7 = scmp.lt.u32.totalorder %s368_s8, %s363_s5 }
  0x18   : > { %p372_p9 = scmp.lt.u32.totalorder %s363_s5, %s541_s28 }
  0x19   : > { %p367_p4 = pneg %p366_p3  ;;  %p371_p8 = por %p370_p7, %p369_p5 }
  0x1b   : > { %p373_p13 = por %p372_p9, %p371_p8 }
  0x1d   : > { %p374_p0 = pnand %p373_p13, %p367_p4 }
  0x1f   : > { %377 = shalt.err (!%p374_p0)
}
  0x20   : > { %s378_s17 = scalar_lea.vmem %s549_s30, 256  ;;  %s461_s19 = smov [#allocation2]  }
  0x21   : > { %p379_p1 = scmp.ne.s32.totalorder %s549_s30, %s378_s17  ;;  %s383_s23 = sshll.u32 %s461_s19, 4  ;;  %s384_s23 = int_to_ptr.vmem [resolvable:$false] %s383_s23 }
  0x22   : > { %s385_s24 = scalar_lea.vmem %s384_s23, 512  ;;  %p386_p10 = scmp.lt.s32.totalorder %s549_s30, %s384_s23 }
  0x23   : > { %p381_p3 = pnand %p379_p1, %p365_p2  ;;  %p387_p5 = scmp.lt.s32.totalorder %s385_s24, %s378_s17 }
  0x25   : > { %p382_p11 = pneg %p381_p3  ;;  %p388_p7 = por %p387_p5, %p386_p10 }
  0x27   : > { %p389_p8 = pnand %p388_p7, %p382_p11 }
  0x29   : > { %392 = shalt.err (!%p389_p8)
}
  0x2a   : > { %318 = dma.hbm_to_vmem [thread:$0]  (!%p545_p12), %s541_s28, 256, %s549_s30, %s122_s4  }
  0x2b   : > { %p652_p13 = scmp.lt.s32.totalorder %s459_s12, 9  ;;  %p653_p0 = scmp.ge.s32.totalorder %s459_s12, 1 }
  0x2d   : > { %p139_p2 = pnand %p653_p0, %p652_p13 }
  0x2e   : > { %s583_s25 = sand.u32 (!%p139_p2), 1, %s451_s10  }
  0x2f   : > { %142 = sbr.rel (%p139_p2) target bundleno = 232 (0xe8), region = 28  ;;  %s300_s26 = sshll.u32 (!%p139_p2), %s583_s25, 4 }
  0x30   : > { %s145_s27 = scalar_lea.sflag (!%p139_p2), [#allocation3], %s583_s25  ;;  %s148_s29 = scalar_lea.vmem (!%p139_p2), [#allocation2], %s300_s26 }
  0x36   : > { %438 = dma.done.wait (%p522_p6), %s145_s27, 256  }
  0x37   : > { %440 = vsyncadd (%p522_p6), %s145_s27, 4294967040  ;;  %p173_p10 = scmp.lt.s32.totalorder %s500_s13, 7  ;;  %v462_v0 = vmov 0   ;;  %v184_v6 = vld [vmem:[%s148_s29] sm:$0xff]  ;;  %v185_v7 = vld [vmem:[%s148_s29 + $0x8] sm:$0xff]  ;;  %s310_s20 = sshll.u32 %s500_s13, 8 }
  0x38   : > { %358 = vset.pattern.permute.xlu0 %v462_v0  ;;  %s172_s6 = scalar_lea.vmem [#allocation5], %s300_s26  ;;  %vm194_vm0 = vcmask 556032   ;;  %s600_s16 = scalar_lea.hbm %s645_s2, %s310_s20 }
  0x39   : > { %s174_s28 = scalar_select %p173_p10, %s500_s13, 7 }
  0x3a   : > { %s211_s7 = sshll.u32 %s172_s6, 4  ;;  %s197_s17 = scalar_lea.sflag [#allocation4], %s583_s25  ;;  %s602_s7 = int_to_ptr.vmem [resolvable:$true] %s211_s7 }
  0x3b   : > { %s302_s30 = sshll.u32 %s174_s28, 3  ;;  %s393_s13 = scalar_lea.vmem %s602_s7, 256 }
  0x3c   : > { %s176_s5 = scalar_lea.vmem %s643_s0, %s302_s30  ;;  %p394_p6 = scmp.ne.s32.totalorder %s602_s7, %s393_s13 }
  0x3d   : > { %v177_v1 = vld [vmem:[%s176_s5] sm:$0xff]  ;;  %p654_p11 = scmp.ne.s32.totalorder %s649_s21, 0  ;;  %s463_s19 = smov [#allocation5]  }
  0x3e   : > { %v303_v2 = vmul.f32 -1.442695, %v177_v1  ;;  %s397_s23 = sshll.u32 %s463_s19, 4  ;;  %s398_s23 = int_to_ptr.vmem [resolvable:$false] %s397_s23 }
  0x3f   : > { %p395_p12 = pnand %p394_p6, %p654_p11  ;;  %s399_s24 = scalar_lea.vmem %s398_s23, 512 }
  0x40   : > { %359 = vpow2.f32 %v303_v2  ;;  %p400_p9 = scmp.lt.s32.totalorder %s602_s7, %s398_s23  ;;  %p401_p1 = scmp.lt.s32.totalorder %s399_s24, %s393_s13 }
  0x41   : > { %p396_p4 = pneg %p395_p12 }
  0x42   : > { %p402_p3 = por %p401_p1, %p400_p9 }
  0x44   : > { %p403_p5 = pnand %p402_p3, %p396_p4 }
  0x4a   : > { %v360_v3 = vpop.eup %359 }
  0x4b   : > { %v181_v4 = vadd.f32 1.0, %v360_v3 }
  0x4d   : > { %361 = vrcp.f32 %v181_v4 }
  0x57   : > { %v362_v5 = vpop.eup %361 }
  0x58   : > { %188 = vperm.xlu0 %358, %v362_v5  }
  0xd7   : > { %v189_v8 = vpop.permute.xlu0 %188 }
  0xd8   : > { %v191_v9 = vmul.f32 %v189_v8, %v184_v6  ;;  %v192_v10 = vmul.f32 %v189_v8, %v185_v7 }
  0xda   : > { %193 = vst [vmem:[%s172_s6] sm:$0xff] %v191_v9  ;;  %195 = vst.msk [vmem:[%s172_s6 + $0x8] sm:$0xff] %vm194_vm0, %v192_v10 }
  0xdb   : > { %406 = shalt.err (!%p403_p5)
}
  0xdc   : > { %s407_s25 = scalar_lea.hbm %s600_s16, 256  ;;  %s411_s29 = scalar_lea.hbm %s645_s2, 2048 }
  0xdd   : > { %p408_p7 = scmp.ne.s32.totalorder %s600_s16, %s407_s25  ;;  %p412_p0 = scmp.lt.u32.totalorder %s600_s16, %s645_s2 }
  0xde   : > { %p413_p2 = scmp.lt.u32.totalorder %s411_s29, %s407_s25  ;;  %p415_p6 = scmp.lt.u32.totalorder %s407_s25, %s600_s16 }
  0xdf   : > { %p409_p8 = pnand %p408_p7, %p654_p11 }
  0xe0   : > { %p414_p10 = por %p413_p2, %p412_p0 }
  0xe1   : > { %p410_p13 = pneg %p409_p8 }
  0xe2   : > { %p416_p12 = por %p415_p6, %p414_p10 }
  0xe4   : > { %p417_p4 = pnand %p416_p12, %p410_p13 }
  0xe6   : > { %420 = shalt.err (!%p417_p4)
}
  0xe7   : > { %313 = dma.vmem_to_hbm [thread:$0]  (%p654_p11), %s602_s7, 256, %s600_s16, %s197_s17  }
  0xe8 PF: > { %p324_p9 = scmp.ge.s32.totalorder %s459_s12, 2  ;;  %s223_s3 = sand.u32 1, %s447_s9  }
  0xe9   : > { %p655_p1 = scmp.ne.s32.totalorder %s650_s22, 0  ;;  %s224_s4 = scalar_lea.sflag [#allocation4], %s223_s3 }
  0xeb   : > { %p320_p3 = pnand %p324_p9, %p655_p1 }
  0xed   : > { %442 = dma.done.wait (!%p320_p3), %s224_s4, 256  }
  0xee   : > { %444 = vsyncadd (!%p320_p3), %s224_s4, 4294967040  ;;  %p15_p5 = scmp.ge.s32.totalorder %s504_s15, 10   ;;  %s656_s9 = smov %s451_s10 }
  0xef   : > { %s657_s10 = smov %s455_s11  ;;  %s658_s11 = smov %s516_s18 }
  0xf0   : > { %s659_s12 = smov %s504_s15  ;;  %17 = sbr.rel (!%p15_p5) target bundleno = 5 (0x5), region = 76 }
  0xf7   :  { %229 = vsyncpa [#allocation3], 1 }
  0xf8   :  { %231 = vsyncpa [#allocation3 + $0x1], 1 }
  0xf9   :  { %232 = vsyncpa [#allocation4], 1 }
  0xfa   :  { %234 = vsyncpa [#allocation4 + $0x1], 1 }

</bundles_post_ra>
